<compile_context>
chip_gen: v7x
topology: tpu7x:2x2x1
jax: 0.10.0
libtpu: 0.0.40
codegen_flags: <defaults>
</compile_context>

<pallas_src>
import numpy as np
import jax
import jax.numpy as jnp
from jax.experimental import pallas as pl
from jax.experimental.pallas import tpu as pltpu


def _shift_flat(v, off, hw):
    """result[:, p] = v[:, p + off] if 0 <= p + off < hw else 0 (static off)."""
    if off == 0:
        return v
    c = v.shape[0]
    zeros = jnp.zeros((c, abs(off)), v.dtype)
    if off > 0:
        return jnp.concatenate([v[:, off:], zeros], axis=1)
    return jnp.concatenate([zeros, v[:, :hw + off]], axis=1)


def _make_kernel(H, W):
    HW = H * W

    def kernel(x_ref, w1_ref, b1_ref, w2sc_ref, b2_ref, o_ref):
        # x_ref   : (1, Cp, HW)          channels-major image, Cp = Cin padded to 8
        # w1_ref  : (Cout, 9*Cp)         conv1 weights, BN1 scale folded in
        # b1_ref  : (Cout, 1)            BN1 shift
        # w2sc_ref: (Cout, 9*Cout + Cp)  [conv2|shortcut] weights, BN scales folded in
        # b2_ref  : (Cout, 1)            BN2 shift + shortcut-BN shift (combined)
        # o_ref   : (1, Cout, HW)
        x = x_ref[0]                                        # (Cp, HW)

        # Per-position column index, used to zero the horizontal taps that
        # crossed a row boundary (the flat shift wraps rows; rows leaving the
        # image top/bottom are already zero-filled by _shift_flat).  Computed
        # once and reused by both im2col expansions.
        col = jax.lax.broadcasted_iota(jnp.int32, (1, HW), 1) % W
        has_left = col >= 1            # a valid left neighbour exists
        has_right = col < (W - 1)      # a valid right neighbour exists

        def tap(v, dy, dx):
            s = _shift_flat(v, dy * W + dx, HW)
            if dx == 1:
                s = jnp.where(has_right, s, 0.0)
            elif dx == -1:
                s = jnp.where(has_left, s, 0.0)
            return s

        def taps9(v):
            # 9 shifted copies, ordered (ky, kx) row-major to match the folded
            # weight layout.  Every piece is 8-sublane aligned.
            return [tap(v, dy, dx) for dy in (-1, 0, 1) for dx in (-1, 0, 1)]

        # conv1 (3x3, pad 1) + BN1 + ReLU : one MXU matmul (K = 9*Cp) + bias + max
        h1 = jnp.dot(w1_ref[...], jnp.concatenate(taps9(x), axis=0),
                     preferred_element_type=jnp.float32)
        h1 = jnp.maximum(h1 + b1_ref[...], 0.0)             # (Cout, HW)

        # conv2 (3x3, pad 1, BN2-folded)  +  shortcut 1x1 (BN-folded), fused
        # into a single matmul:  [w2 | wsc] @ [im2col(h1) ; x]   (K = 80)
        rhs2 = jnp.concatenate(taps9(h1) + [x], axis=0)      # (9*Cout + Cp, HW)
        y = jnp.dot(w2sc_ref[...], rhs2, preferred_element_type=jnp.float32)

        # attn = Identity ; act = ReLU ; depad = Identity
        o_ref[0] = jnp.maximum(y + b2_ref[...], 0.0).astype(o_ref.dtype)

    return kernel


def fold_params(params, cin_pad):
    """Fold eval-mode BatchNorm into the conv weights and lay them out as
    (Cout, K) matrices matching the kernel's channels-major im2col order."""
    (w1, s1, b1, w2, s2, b2, wsc, ssc, bsc) = params
    cin, cout = w1.shape[2], w1.shape[3]
    # zero-pad the input-channel axis so it matches the padded activations
    w1p = jnp.pad(w1, ((0, 0), (0, 0), (0, cin_pad - cin), (0, 0)))
    wscp = jnp.pad(wsc, ((0, cin_pad - cin), (0, 0)))
    w1f = (w1p.reshape(-1, cout) * s1).T        # (Cout, 9*cin_pad)
    w2f = (w2.reshape(-1, cout) * s2).T         # (Cout, 9*Cout)
    wscf = (wscp * ssc).T                       # (Cout, cin_pad)
    w2scf = jnp.concatenate([w2f, wscf], axis=1)  # (Cout, 9*Cout + cin_pad)
    b1f = b1.reshape(cout, 1)
    b2f = (b2 + bsc).reshape(cout, 1)           # conv2-BN + shortcut-BN shifts
    return w1f, b1f, w2scf, b2f


def resblock_pallas(x_nchw, params):
    N, Cin, H, W = x_nchw.shape
    Cout = params[0].shape[-1]
    HW = H * W
    cin_pad = ((Cin + 7) // 8) * 8              # sublane-align input channels

    w1f, b1f, w2scf, b2f = fold_params(params, cin_pad)

    # channels-major flat layout: a free reshape of NCHW (no transpose, no
    # spatial pad).  Only the tiny 4->8 channel pad copies data.
    x_flat = x_nchw.reshape(N, Cin, HW)
    if cin_pad != Cin:
        x_flat = jnp.pad(x_flat, ((0, 0), (0, cin_pad - Cin), (0, 0)))

    full = lambda a: pl.BlockSpec(a.shape, lambda b: (0,) * a.ndim)

    flops_per_img = 2 * HW * Cout * (9 * cin_pad + 9 * Cout + cin_pad)
    out = pl.pallas_call(
        _make_kernel(H, W),
        out_shape=jax.ShapeDtypeStruct((N, Cout, HW), jnp.float32),
        grid_spec=pltpu.PrefetchScalarGridSpec(
            num_scalar_prefetch=0,
            grid=(N,),
            in_specs=[
                pl.BlockSpec((1, cin_pad, HW), lambda b: (b, 0, 0)),
                full(w1f), full(b1f), full(w2scf), full(b2f),
            ],
            out_specs=pl.BlockSpec((1, Cout, HW), lambda b: (b, 0, 0)),
        ),
        compiler_params=pltpu.CompilerParams(
            dimension_semantics=("parallel",)),
        cost_estimate=pl.CostEstimate(
            flops=N * flops_per_img,
            transcendentals=0,
            bytes_accessed=4 * (N * (cin_pad + Cout) * HW
                                + w1f.size + w2scf.size + b1f.size + b2f.size)),
    )(x_flat, w1f, b1f, w2scf, b2f)

    # free reshape back to PyTorch's NCHW convention
    return out.reshape(N, Cout, H, W)


def resblock_ref(x_nchw, params):
    """Pure-JAX reference (NHWC convs via lax) for verification."""
    (w1, s1, b1, w2, s2, b2, wsc, ssc, bsc) = params
    x = jnp.transpose(x_nchw, (0, 2, 3, 1))

    def conv(x, w, pad):
        return jax.lax.conv_general_dilated(
            x, w, window_strides=(1, 1), padding=((pad, pad), (pad, pad)),
            dimension_numbers=('NHWC', 'HWIO', 'NHWC'))

    h = jnp.maximum(conv(x, w1, 1) * s1 + b1, 0.0)
    h = conv(h, w2, 1) * s2 + b2
    sc = conv(x, wsc.reshape(1, 1, *wsc.shape), 0) * ssc + bsc
    out = jnp.maximum(h + sc, 0.0)
    return jnp.transpose(out, (0, 3, 1, 2))


def fold_bn(gamma, beta, mean, var, eps=1e-5):
    scale = gamma / jnp.sqrt(var + eps)
    shift = beta - mean * scale
    return (scale.reshape(1, -1).astype(jnp.float32),
            shift.reshape(1, -1).astype(jnp.float32))


def make_params(key, cin, cout):
    ks = jax.random.split(key, 3)
    w1 = 0.1 * jax.random.normal(ks[0], (3, 3, cin, cout), jnp.float32)
    w2 = 0.1 * jax.random.normal(ks[1], (3, 3, cout, cout), jnp.float32)
    wsc = 0.1 * jax.random.normal(ks[2], (cin, cout), jnp.float32)

    # deterministic (eval-mode) BatchNorm parameters
    idx = jnp.arange(cout, dtype=jnp.float32)
    s1, b1 = fold_bn(1.0 + 0.05 * idx, 0.01 * idx, 0.02 * idx, 1.0 + 0.10 * idx)
    s2, b2 = fold_bn(1.0 - 0.03 * idx, -0.02 * idx, -0.01 * idx, 1.0 + 0.05 * idx)
    ssc, bsc = fold_bn(1.0 + 0.02 * idx, 0.03 * idx, 0.01 * idx, 1.0 + 0.02 * idx)
    return (w1, s1, b1, w2, s2, b2, wsc, ssc, bsc)


if __name__ == "__main__":
    key = jax.random.PRNGKey(0)
    kx, kp = jax.random.split(key)

    N, Cin, Cout, H, W = 2, 4, 8, 16, 16
    x = jax.random.normal(kx, (N, Cin, H, W), jnp.float32)   # PyTorch-style NCHW
    params = make_params(kp, Cin, Cout)

    out = jax.block_until_ready(resblock_pallas(x, params))
    ref = jax.block_until_ready(resblock_ref(x, params))

    np.testing.assert_allclose(np.asarray(out), np.asarray(ref),
                               rtol=1e-4, atol=1e-4)
    print("KERNEL_OK")
</pallas_src>

<mosaic_0001>
module attributes {stable_mosaic.version = 11 : i64} {
  func.func @kernel(%arg0: i32, %arg1: memref<1x8x256xf32, #tpu.memory_space<vmem>>, %arg2: memref<8x72xf32, #tpu.memory_space<vmem>>, %arg3: memref<8x1xf32, #tpu.memory_space<vmem>>, %arg4: memref<8x80xf32, #tpu.memory_space<vmem>>, %arg5: memref<8x1xf32, #tpu.memory_space<vmem>>, %arg6: memref<1x8x256xf32, #tpu.memory_space<vmem>>) attributes {dimension_semantics = [#tpu.dimension_semantics<parallel>], iteration_bounds = array<i64: 2>, scalar_prefetch = 0 : i64, scratch_operands = 0 : i64, tpu.core_type = #tpu.core_type<tc>, window_params = [{transform_indices = @transform_0, window_bounds = array<i64: 1, 8, 256>}, {pipeline_mode = #tpu.pipeline_mode<synchronous>, transform_indices = @transform_1, window_bounds = array<i64: 8, 72>}, {pipeline_mode = #tpu.pipeline_mode<synchronous>, transform_indices = @transform_2, window_bounds = array<i64: 8, 1>}, {pipeline_mode = #tpu.pipeline_mode<synchronous>, transform_indices = @transform_3, window_bounds = array<i64: 8, 80>}, {pipeline_mode = #tpu.pipeline_mode<synchronous>, transform_indices = @transform_4, window_bounds = array<i64: 8, 1>}, {transform_indices = @transform_5, window_bounds = array<i64: 1, 8, 256>}]} {
    %c0 = arith.constant 0 : index
    %c0_0 = arith.constant 0 : index
    %c0_1 = arith.constant 0 : index
    %0 = vector.load %arg1[%c0, %c0_0, %c0_1] : memref<1x8x256xf32, #tpu.memory_space<vmem>>, vector<1x8x256xf32>
    %1 = vector.shape_cast %0 : vector<1x8x256xf32> to vector<8x256xf32>
    %2 = tpu.iota {dimensions = array<i32: 1>} : vector<1x256xi32>
    %c16_i32 = arith.constant 16 : i32
    %c0_i32 = arith.constant 0 : i32
    %3 = arith.cmpi eq, %c16_i32, %c0_i32 : i32
    %c1_i32 = arith.constant 1 : i32
    %4 = arith.select %3, %c1_i32, %c16_i32 : i32
    %5 = vector.broadcast %4 : i32 to vector<1x256xi32>
    %6 = arith.remsi %2, %5 : vector<1x256xi32>
    %c0_i32_2 = arith.constant 0 : i32
    %7 = vector.broadcast %c0_i32_2 : i32 to vector<1x256xi32>
    %8 = arith.cmpi ne, %6, %7 : vector<1x256xi32>
    %c0_i32_3 = arith.constant 0 : i32
    %9 = vector.broadcast %c0_i32_3 : i32 to vector<1x256xi32>
    %10 = arith.cmpi slt, %6, %9 : vector<1x256xi32>
    %c0_i32_4 = arith.constant 0 : i32
    %11 = arith.cmpi slt, %4, %c0_i32_4 : i32
    %12 = vector.broadcast %11 : i1 to vector<1x256xi1>
    %13 = vector.broadcast %12 : vector<1x256xi1> to vector<1x256xi1>
    %14 = arith.xori %10, %13 : vector<1x256xi1>
    %15 = arith.andi %14, %8 : vector<1x256xi1>
    %16 = vector.broadcast %4 : i32 to vector<1x256xi32>
    %17 = arith.addi %6, %16 : vector<1x256xi32>
    %18 = arith.select %15, %17, %6 : vector<1x256xi1>, vector<1x256xi32>
    %c1_i32_5 = arith.constant 1 : i32
    %19 = vector.broadcast %c1_i32_5 : i32 to vector<1x256xi32>
    %20 = arith.cmpi sge, %18, %19 : vector<1x256xi32>
    %c15_i32 = arith.constant 15 : i32
    %21 = vector.broadcast %c15_i32 : i32 to vector<1x256xi32>
    %22 = arith.cmpi slt, %18, %21 : vector<1x256xi32>
    %c0_6 = arith.constant 0 : index
    %c0_7 = arith.constant 0 : index
    %23 = vector.load %arg2[%c0_6, %c0_7] : memref<8x72xf32, #tpu.memory_space<vmem>>, vector<8x72xf32>
    %cst = arith.constant 0.000000e+00 : f32
    %24 = vector.broadcast %cst : f32 to vector<8x17xf32>
    %25 = vector.extract_strided_slice %1 {offsets = [0, 0], sizes = [8, 239], strides = [1, 1]} : vector<8x256xf32> to vector<8x239xf32>
    %26 = tpu.concatenate %24, %25 in 1 : vector<8x17xf32>, vector<8x239xf32> -> vector<8x256xf32>
    %cst_8 = arith.constant 0.000000e+00 : f32
    %27 = vector.shape_cast %20 : vector<1x256xi1> to vector<1x256xi1>
    %28 = vector.broadcast %27 : vector<1x256xi1> to vector<8x256xi1>
    %29 = vector.broadcast %cst_8 : f32 to vector<8x256xf32>
    %30 = arith.select %28, %26, %29 : vector<8x256xi1>, vector<8x256xf32>
    %cst_9 = arith.constant 0.000000e+00 : f32
    %31 = vector.broadcast %cst_9 : f32 to vector<8x16xf32>
    %32 = vector.extract_strided_slice %1 {offsets = [0, 0], sizes = [8, 240], strides = [1, 1]} : vector<8x256xf32> to vector<8x240xf32>
    %33 = tpu.concatenate %31, %32 in 1 : vector<8x16xf32>, vector<8x240xf32> -> vector<8x256xf32>
    %cst_10 = arith.constant 0.000000e+00 : f32
    %34 = vector.broadcast %cst_10 : f32 to vector<8x15xf32>
    %35 = vector.extract_strided_slice %1 {offsets = [0, 0], sizes = [8, 241], strides = [1, 1]} : vector<8x256xf32> to vector<8x241xf32>
    %36 = tpu.concatenate %34, %35 in 1 : vector<8x15xf32>, vector<8x241xf32> -> vector<8x256xf32>
    %cst_11 = arith.constant 0.000000e+00 : f32
    %37 = vector.shape_cast %22 : vector<1x256xi1> to vector<1x256xi1>
    %38 = vector.broadcast %37 : vector<1x256xi1> to vector<8x256xi1>
    %39 = vector.broadcast %cst_11 : f32 to vector<8x256xf32>
    %40 = arith.select %38, %36, %39 : vector<8x256xi1>, vector<8x256xf32>
    %cst_12 = arith.constant 0.000000e+00 : f32
    %41 = vector.broadcast %cst_12 : f32 to vector<8x1xf32>
    %42 = vector.extract_strided_slice %1 {offsets = [0, 0], sizes = [8, 255], strides = [1, 1]} : vector<8x256xf32> to vector<8x255xf32>
    %43 = tpu.concatenate %41, %42 in 1 : vector<8x1xf32>, vector<8x255xf32> -> vector<8x256xf32>
    %cst_13 = arith.constant 0.000000e+00 : f32
    %44 = vector.shape_cast %20 : vector<1x256xi1> to vector<1x256xi1>
    %45 = vector.broadcast %44 : vector<1x256xi1> to vector<8x256xi1>
    %46 = vector.broadcast %cst_13 : f32 to vector<8x256xf32>
    %47 = arith.select %45, %43, %46 : vector<8x256xi1>, vector<8x256xf32>
    %cst_14 = arith.constant 0.000000e+00 : f32
    %48 = vector.broadcast %cst_14 : f32 to vector<8x1xf32>
    %49 = vector.extract_strided_slice %1 {offsets = [0, 1], sizes = [8, 255], strides = [1, 1]} : vector<8x256xf32> to vector<8x255xf32>
    %50 = tpu.concatenate %49, %48 in 1 : vector<8x255xf32>, vector<8x1xf32> -> vector<8x256xf32>
    %cst_15 = arith.constant 0.000000e+00 : f32
    %51 = vector.shape_cast %22 : vector<1x256xi1> to vector<1x256xi1>
    %52 = vector.broadcast %51 : vector<1x256xi1> to vector<8x256xi1>
    %53 = vector.broadcast %cst_15 : f32 to vector<8x256xf32>
    %54 = arith.select %52, %50, %53 : vector<8x256xi1>, vector<8x256xf32>
    %cst_16 = arith.constant 0.000000e+00 : f32
    %55 = vector.broadcast %cst_16 : f32 to vector<8x15xf32>
    %56 = vector.extract_strided_slice %1 {offsets = [0, 15], sizes = [8, 241], strides = [1, 1]} : vector<8x256xf32> to vector<8x241xf32>
    %57 = tpu.concatenate %56, %55 in 1 : vector<8x241xf32>, vector<8x15xf32> -> vector<8x256xf32>
    %cst_17 = arith.constant 0.000000e+00 : f32
    %58 = vector.shape_cast %20 : vector<1x256xi1> to vector<1x256xi1>
    %59 = vector.broadcast %58 : vector<1x256xi1> to vector<8x256xi1>
    %60 = vector.broadcast %cst_17 : f32 to vector<8x256xf32>
    %61 = arith.select %59, %57, %60 : vector<8x256xi1>, vector<8x256xf32>
    %cst_18 = arith.constant 0.000000e+00 : f32
    %62 = vector.broadcast %cst_18 : f32 to vector<8x16xf32>
    %63 = vector.extract_strided_slice %1 {offsets = [0, 16], sizes = [8, 240], strides = [1, 1]} : vector<8x256xf32> to vector<8x240xf32>
    %64 = tpu.concatenate %63, %62 in 1 : vector<8x240xf32>, vector<8x16xf32> -> vector<8x256xf32>
    %cst_19 = arith.constant 0.000000e+00 : f32
    %65 = vector.broadcast %cst_19 : f32 to vector<8x17xf32>
    %66 = vector.extract_strided_slice %1 {offsets = [0, 17], sizes = [8, 239], strides = [1, 1]} : vector<8x256xf32> to vector<8x239xf32>
    %67 = tpu.concatenate %66, %65 in 1 : vector<8x239xf32>, vector<8x17xf32> -> vector<8x256xf32>
    %cst_20 = arith.constant 0.000000e+00 : f32
    %68 = vector.shape_cast %22 : vector<1x256xi1> to vector<1x256xi1>
    %69 = vector.broadcast %68 : vector<1x256xi1> to vector<8x256xi1>
    %70 = vector.broadcast %cst_20 : f32 to vector<8x256xf32>
    %71 = arith.select %69, %67, %70 : vector<8x256xi1>, vector<8x256xf32>
    %72 = tpu.concatenate %30, %33, %40, %47, %1, %54, %61, %64, %71 in 0 : vector<8x256xf32>, vector<8x256xf32>, vector<8x256xf32>, vector<8x256xf32>, vector<8x256xf32>, vector<8x256xf32>, vector<8x256xf32>, vector<8x256xf32>, vector<8x256xf32> -> vector<72x256xf32>
    %cst_21 = arith.constant dense<0.000000e+00> : vector<8x256xf32>
    %73 = tpu.matmul %23, %72, %cst_21 {dimension_numbers = #tpu.dot_dimension_numbers<[1], [0], [0], [1], [0, 0, 1, 1], [], []>} : vector<8x72xf32>, vector<72x256xf32>, vector<8x256xf32> -> vector<8x256xf32>
    %c0_22 = arith.constant 0 : index
    %c0_23 = arith.constant 0 : index
    %74 = vector.load %arg3[%c0_22, %c0_23] : memref<8x1xf32, #tpu.memory_space<vmem>>, vector<8x1xf32>
    %75 = vector.broadcast %74 : vector<8x1xf32> to vector<8x256xf32>
    %76 = arith.addf %73, %75 : vector<8x256xf32>
    %cst_24 = arith.constant 0.000000e+00 : f32
    %77 = vector.broadcast %cst_24 : f32 to vector<8x256xf32>
    %78 = arith.maximumf %76, %77 : vector<8x256xf32>
    %cst_25 = arith.constant 0.000000e+00 : f32
    %79 = vector.broadcast %cst_25 : f32 to vector<8x17xf32>
    %80 = vector.extract_strided_slice %78 {offsets = [0, 0], sizes = [8, 239], strides = [1, 1]} : vector<8x256xf32> to vector<8x239xf32>
    %81 = tpu.concatenate %79, %80 in 1 : vector<8x17xf32>, vector<8x239xf32> -> vector<8x256xf32>
    %cst_26 = arith.constant 0.000000e+00 : f32
    %82 = vector.shape_cast %20 : vector<1x256xi1> to vector<1x256xi1>
    %83 = vector.broadcast %82 : vector<1x256xi1> to vector<8x256xi1>
    %84 = vector.broadcast %cst_26 : f32 to vector<8x256xf32>
    %85 = arith.select %83, %81, %84 : vector<8x256xi1>, vector<8x256xf32>
    %cst_27 = arith.constant 0.000000e+00 : f32
    %86 = vector.broadcast %cst_27 : f32 to vector<8x16xf32>
    %87 = vector.extract_strided_slice %78 {offsets = [0, 0], sizes = [8, 240], strides = [1, 1]} : vector<8x256xf32> to vector<8x240xf32>
    %88 = tpu.concatenate %86, %87 in 1 : vector<8x16xf32>, vector<8x240xf32> -> vector<8x256xf32>
    %cst_28 = arith.constant 0.000000e+00 : f32
    %89 = vector.broadcast %cst_28 : f32 to vector<8x15xf32>
    %90 = vector.extract_strided_slice %78 {offsets = [0, 0], sizes = [8, 241], strides = [1, 1]} : vector<8x256xf32> to vector<8x241xf32>
    %91 = tpu.concatenate %89, %90 in 1 : vector<8x15xf32>, vector<8x241xf32> -> vector<8x256xf32>
    %cst_29 = arith.constant 0.000000e+00 : f32
    %92 = vector.shape_cast %22 : vector<1x256xi1> to vector<1x256xi1>
    %93 = vector.broadcast %92 : vector<1x256xi1> to vector<8x256xi1>
    %94 = vector.broadcast %cst_29 : f32 to vector<8x256xf32>
    %95 = arith.select %93, %91, %94 : vector<8x256xi1>, vector<8x256xf32>
    %cst_30 = arith.constant 0.000000e+00 : f32
    %96 = vector.broadcast %cst_30 : f32 to vector<8x1xf32>
    %97 = vector.extract_strided_slice %78 {offsets = [0, 0], sizes = [8, 255], strides = [1, 1]} : vector<8x256xf32> to vector<8x255xf32>
    %98 = tpu.concatenate %96, %97 in 1 : vector<8x1xf32>, vector<8x255xf32> -> vector<8x256xf32>
    %cst_31 = arith.constant 0.000000e+00 : f32
    %99 = vector.shape_cast %20 : vector<1x256xi1> to vector<1x256xi1>
    %100 = vector.broadcast %99 : vector<1x256xi1> to vector<8x256xi1>
    %101 = vector.broadcast %cst_31 : f32 to vector<8x256xf32>
    %102 = arith.select %100, %98, %101 : vector<8x256xi1>, vector<8x256xf32>
    %cst_32 = arith.constant 0.000000e+00 : f32
    %103 = vector.broadcast %cst_32 : f32 to vector<8x1xf32>
    %104 = vector.extract_strided_slice %78 {offsets = [0, 1], sizes = [8, 255], strides = [1, 1]} : vector<8x256xf32> to vector<8x255xf32>
    %105 = tpu.concatenate %104, %103 in 1 : vector<8x255xf32>, vector<8x1xf32> -> vector<8x256xf32>
    %cst_33 = arith.constant 0.000000e+00 : f32
    %106 = vector.shape_cast %22 : vector<1x256xi1> to vector<1x256xi1>
    %107 = vector.broadcast %106 : vector<1x256xi1> to vector<8x256xi1>
    %108 = vector.broadcast %cst_33 : f32 to vector<8x256xf32>
    %109 = arith.select %107, %105, %108 : vector<8x256xi1>, vector<8x256xf32>
    %cst_34 = arith.constant 0.000000e+00 : f32
    %110 = vector.broadcast %cst_34 : f32 to vector<8x15xf32>
    %111 = vector.extract_strided_slice %78 {offsets = [0, 15], sizes = [8, 241], strides = [1, 1]} : vector<8x256xf32> to vector<8x241xf32>
    %112 = tpu.concatenate %111, %110 in 1 : vector<8x241xf32>, vector<8x15xf32> -> vector<8x256xf32>
    %cst_35 = arith.constant 0.000000e+00 : f32
    %113 = vector.shape_cast %20 : vector<1x256xi1> to vector<1x256xi1>
    %114 = vector.broadcast %113 : vector<1x256xi1> to vector<8x256xi1>
    %115 = vector.broadcast %cst_35 : f32 to vector<8x256xf32>
    %116 = arith.select %114, %112, %115 : vector<8x256xi1>, vector<8x256xf32>
    %cst_36 = arith.constant 0.000000e+00 : f32
    %117 = vector.broadcast %cst_36 : f32 to vector<8x16xf32>
    %118 = vector.extract_strided_slice %78 {offsets = [0, 16], sizes = [8, 240], strides = [1, 1]} : vector<8x256xf32> to vector<8x240xf32>
    %119 = tpu.concatenate %118, %117 in 1 : vector<8x240xf32>, vector<8x16xf32> -> vector<8x256xf32>
    %cst_37 = arith.constant 0.000000e+00 : f32
    %120 = vector.broadcast %cst_37 : f32 to vector<8x17xf32>
    %121 = vector.extract_strided_slice %78 {offsets = [0, 17], sizes = [8, 239], strides = [1, 1]} : vector<8x256xf32> to vector<8x239xf32>
    %122 = tpu.concatenate %121, %120 in 1 : vector<8x239xf32>, vector<8x17xf32> -> vector<8x256xf32>
    %cst_38 = arith.constant 0.000000e+00 : f32
    %123 = vector.shape_cast %22 : vector<1x256xi1> to vector<1x256xi1>
    %124 = vector.broadcast %123 : vector<1x256xi1> to vector<8x256xi1>
    %125 = vector.broadcast %cst_38 : f32 to vector<8x256xf32>
    %126 = arith.select %124, %122, %125 : vector<8x256xi1>, vector<8x256xf32>
    %127 = tpu.concatenate %85, %88, %95, %102, %78, %109, %116, %119, %126, %1 in 0 : vector<8x256xf32>, vector<8x256xf32>, vector<8x256xf32>, vector<8x256xf32>, vector<8x256xf32>, vector<8x256xf32>, vector<8x256xf32>, vector<8x256xf32>, vector<8x256xf32>, vector<8x256xf32> -> vector<80x256xf32>
    %c0_39 = arith.constant 0 : index
    %c0_40 = arith.constant 0 : index
    %128 = vector.load %arg4[%c0_39, %c0_40] : memref<8x80xf32, #tpu.memory_space<vmem>>, vector<8x80xf32>
    %cst_41 = arith.constant dense<0.000000e+00> : vector<8x256xf32>
    %129 = tpu.matmul %128, %127, %cst_41 {dimension_numbers = #tpu.dot_dimension_numbers<[1], [0], [0], [1], [0, 0, 1, 1], [], []>} : vector<8x80xf32>, vector<80x256xf32>, vector<8x256xf32> -> vector<8x256xf32>
    %c0_42 = arith.constant 0 : index
    %c0_43 = arith.constant 0 : index
    %130 = vector.load %arg5[%c0_42, %c0_43] : memref<8x1xf32, #tpu.memory_space<vmem>>, vector<8x1xf32>
    %131 = vector.broadcast %130 : vector<8x1xf32> to vector<8x256xf32>
    %132 = arith.addf %129, %131 : vector<8x256xf32>
    %cst_44 = arith.constant 0.000000e+00 : f32
    %133 = vector.broadcast %cst_44 : f32 to vector<8x256xf32>
    %134 = arith.maximumf %132, %133 : vector<8x256xf32>
    %c0_45 = arith.constant 0 : index
    %c0_46 = arith.constant 0 : index
    %c0_47 = arith.constant 0 : index
    %135 = vector.load %arg6[%c0_45, %c0_46, %c0_47] : memref<1x8x256xf32, #tpu.memory_space<vmem>>, vector<1x8x256xf32>
    %136 = vector.shape_cast %135 : vector<1x8x256xf32> to vector<8x256xf32>
    %137 = vector.shape_cast %134 : vector<8x256xf32> to vector<1x8x256xf32>
    tpu.vector_store %arg6[%c0_45, %c0_46, %c0_47], %137 {strides = array<i32>} : memref<1x8x256xf32, #tpu.memory_space<vmem>>, vector<1x8x256xf32>,
    return
  }
  func.func @transform_0(%arg0: i32) -> (i32, i32, i32) {
    %c0_i32 = arith.constant 0 : i32
    %c0_i32_0 = arith.constant 0 : i32
    %c0_i32_1 = arith.constant 0 : i32
    return %arg0, %c0_i32, %c0_i32_0 : i32, i32, i32
  }
  func.func @transform_1(%arg0: i32) -> (i32, i32) {
    %c0_i32 = arith.constant 0 : i32
    %c0_i32_0 = arith.constant 0 : i32
    %c0_i32_1 = arith.constant 0 : i32
    return %c0_i32, %c0_i32_0 : i32, i32
  }
  func.func @transform_2(%arg0: i32) -> (i32, i32) {
    %c0_i32 = arith.constant 0 : i32
    %c0_i32_0 = arith.constant 0 : i32
    %c0_i32_1 = arith.constant 0 : i32
    return %c0_i32, %c0_i32_0 : i32, i32
  }
  func.func @transform_3(%arg0: i32) -> (i32, i32) {
    %c0_i32 = arith.constant 0 : i32
    %c0_i32_0 = arith.constant 0 : i32
    %c0_i32_1 = arith.constant 0 : i32
    return %c0_i32, %c0_i32_0 : i32, i32
  }
  func.func @transform_4(%arg0: i32) -> (i32, i32) {
    %c0_i32 = arith.constant 0 : i32
    %c0_i32_0 = arith.constant 0 : i32
    %c0_i32_1 = arith.constant 0 : i32
    return %c0_i32, %c0_i32_0 : i32, i32
  }
  func.func @transform_5(%arg0: i32) -> (i32, i32, i32) {
    %c0_i32 = arith.constant 0 : i32
    %c0_i32_0 = arith.constant 0 : i32
    %c0_i32_1 = arith.constant 0 : i32
    return %arg0, %c0_i32, %c0_i32_0 : i32, i32, i32
  }
}

</mosaic_0001>

<bundles_post_ra>
// kernel: tpu_custom_call.1
= control target key start
LH: loop header
LB: loop body
LE: loop exit
PB: predicated region body
PF: predicated region fallthrough
CT: control target
= control target key end

     0   :  { %10 = vsyncpa [#allocation3], 0  ;;  %s1447_s0 = inlined_call_operand.hbm [shape: f32[2,8,256], index: 0, kind: input, shape index: {}]   ;;  %s1448_s1 = inlined_call_operand.vmem [shape: f32[8,72], index: 1, kind: input, shape index: {}]   ;;  %s1449_s2 = inlined_call_operand.vmem [shape: f32[8,1], index: 2, kind: input, shape index: {}]   ;;  %s1450_s3 = inlined_call_operand.vmem [shape: f32[8,80], index: 3, kind: input, shape index: {}]   ;;  %s1451_s4 = inlined_call_operand.vmem [shape: f32[8,1], index: 4, kind: input, shape index: {}]   ;;  %s1452_s5 = inlined_call_operand.hbm [shape: f32[2,8,256], index: 5, kind: output, shape index: {}]  }
   0x1   :  { %12 = vsyncpa [#allocation3 + $0x1], 0 }
   0x2   :  { %13 = vsyncpa [#allocation4], 0 }
   0x3   :  { %15 = vsyncpa [#allocation4 + $0x1], 0  ;;  %s1078_s18 = smov 0   ;;  %s1080_s19 = smov 0  }
   0x4   :  { %s1082_s20 = smov 0   ;;  %s1084_s21 = smov 0  }
   0x5 LB: > { %s1099_s22 = sadd.s32 4294967295, %s1033_s21   ;;  %s701_s23 = sadd.s32 4294967294, %s1033_s21   ;;  %s1033_s21 = sphi %s1084_s21, %s1504_s21   ;;  %s1029_s20 = sphi %s1082_s20, %s1503_s20   ;;  %s1025_s19 = sphi %s1080_s19, %s1502_s19   ;;  %s1021_s18 = sphi %s1078_s18, %s1501_s18  }
   0x6   : > { %s1103_s24 = sadd.s32 1, %s1033_s21   ;;  %s28_s25 = sadd.s32 1, %s1029_s20 }
   0x7   : > { %s25_s26 = ssub.s32 %s1033_s21, %s1103_s24  ;;  %p35_p0 = scmp.ne.s32.totalorder %s1029_s20, %s1025_s19 }
   0x8   : > { %p26_p1 = scmp.eq.s32.totalorder %s25_s26, 0  ;;  %p36_p2 = scmp.eq.s32.totalorder %s1033_s21, 0 }
   0x9   : > { %p41_p3 = scmp.ne.s32.totalorder %s1025_s19, %s1021_s18  ;;  %p42_p4 = scmp.eq.s32.totalorder %s1099_s22, 0 }
   0xa   : > { %s1115_s27 = scalar_select %p26_p1, %s1029_s20, %s28_s25  }
   0xb   : > { %p1117_p5 = por %p36_p2, %p35_p0  ;;  %p1121_p6 = por %p42_p4, %p41_p3 }
   0xc   : > { %p149_p7 = scmp.eq.s32.totalorder %s1099_s22, 1  ;;  %p155_p8 = scmp.eq.s32.totalorder %s701_s23, 1 }
   0xd   : > { %p815_p10 = scmp.lt.s32.totalorder %s1033_s21, 2  ;;  %s187_s7 = sand.u32 1, %s1029_s20  }
   0xe   : > { %p1128_p11 = por %p149_p7, %p35_p0  ;;  %p1132_p12 = por %p155_p8, %p41_p3 }
   0xf   : > { %s747_s8 = sshll.u32 %s1033_s21, 8  ;;  %s704_s9 = sshll.u32 %s187_s7, 4 }
  0x10   : > { %s1463_s30 = scalar_select %p1128_p11, 1, 0 }
  0x11   : > { %s1464_s6 = scalar_select %p1132_p12, 1, 0 }
  0x12   : > { %s1141_s12 = scalar_lea.hbm %s1447_s0, %s747_s8  ;;  %s191_s13 = scalar_lea.vmem [#allocation2], %s704_s9 }
  0x13   : > { %s199_s14 = sshll.u32 %s191_s13, 4  ;;  %p1145_p13 = pnand %p815_p10, %p1117_p5  ;;  %s1149_s14 = int_to_ptr.vmem [resolvable:$true] %s199_s14 }
  0x14   : > { %s188_s16 = scalar_lea.sflag [#allocation3], %s187_s7  ;;  %s937_s17 = scalar_lea.hbm %s1141_s12, 256 }
  0x15   : > { %p938_p2 = scmp.ne.s32.totalorder %s1141_s12, %s937_s17  ;;  %p939_p3 = pneg %p1145_p13 }
  0x16   : > { %s942_s26 = scalar_lea.hbm %s1447_s0, 512  ;;  %p943_p5 = scmp.lt.u32.totalorder %s1141_s12, %s1447_s0 }
  0x17   : > { %p940_p4 = pnand %p939_p3, %p938_p2  ;;  %p944_p8 = scmp.lt.u32.totalorder %s942_s26, %s937_s17 }
  0x18   : > { %p946_p9 = scmp.lt.u32.totalorder %s937_s17, %s1141_s12 }
  0x19   : > { %p941_p7 = pneg %p940_p4  ;;  %p945_p10 = por %p944_p8, %p943_p5 }
  0x1b   : > { %p947_p0 = por %p946_p9, %p945_p10 }
  0x1d   : > { %p948_p1 = pnand %p947_p0, %p941_p7 }
  0x1f   : > { %951 = shalt.err (!%p948_p1)
}
  0x20   : > { %s952_s7 = scalar_lea.vmem %s1149_s14, 256  ;;  %s1035_s9 = smov [#allocation2]  }
  0x21   : > { %p953_p2 = scmp.ne.s32.totalorder %s1149_s14, %s952_s7  ;;  %s957_s10 = sshll.u32 %s1035_s9, 4  ;;  %s958_s10 = int_to_ptr.vmem [resolvable:$false] %s957_s10 }
  0x22   : > { %s959_s11 = scalar_lea.vmem %s958_s10, 512  ;;  %p960_p11 = scmp.lt.s32.totalorder %s1149_s14, %s958_s10 }
  0x23   : > { %p955_p4 = pnand %p953_p2, %p939_p3  ;;  %p961_p5 = scmp.lt.s32.totalorder %s959_s11, %s952_s7 }
  0x25   : > { %p956_p12 = pneg %p955_p4  ;;  %p962_p8 = por %p961_p5, %p960_p11 }
  0x27   : > { %p963_p9 = pnand %p962_p8, %p956_p12 }
  0x29   : > { %966 = shalt.err (!%p963_p9)
}
  0x2a   : > { %810 = dma.hbm_to_vmem [thread:$0]  (!%p1145_p13), %s1141_s12, 256, %s1149_s14, %s188_s16  }
  0x2b   : > { %p1466_p0 = scmp.lt.s32.totalorder %s1033_s21, 3  ;;  %p1467_p1 = scmp.ge.s32.totalorder %s1033_s21, 1 }
  0x2d   : > { %p205_p3 = pnand %p1467_p1, %p1466_p0 }
  0x2e   : > { %s1183_s13 = sand.u32 (!%p205_p3), 1, %s1025_s19  }
  0x2f   : > { %208 = sbr.rel (%p205_p3) target bundleno = 790 (0x316), region = 40  ;;  %s708_s17 = sshll.u32 (!%p205_p3), %s1183_s13, 4 }
  0x30   : > { %s211_s23 = scalar_lea.sflag (!%p205_p3), [#allocation3], %s1183_s13  ;;  %s214_s15 = scalar_lea.vmem (!%p205_p3), [#allocation2], %s708_s17 }
  0x36   : > { %1012 = dma.done.wait (%p1121_p6), %s211_s23, 256  }
  0x37   : > { %1014 = vsyncadd (%p1121_p6), %s211_s23, 4294967040  ;;  %v1193_v0 = vld [vmem:[%s214_s15] sm:$0xff]  ;;  %v1195_v1 = vld [vmem:[%s214_s15 + $0x8] sm:$0xff]  ;;  %s1036_s12 = smov 15   ;;  %s1037_s14 = smov 17   ;;  %v1044_v4 = vmov 0.0   ;;  %v243_v7 = vlaneseq }
  0x38   : > { %v870_v2 = vpack.i.bf16 %v1195_v1, %v1193_v0  ;;  %s1038_s16 = smov 1   ;;  %s1039_s25 = smov 16   ;;  %v880_v3 = vpack.i.bf16 %v1193_v0, %v1195_v1  ;;  %443 = vmatprep.mubr.f32.mxu0 %v1044_v4  ;;  %605 = vmatprep.mubr.f32.mxu1 %v1044_v4  ;;  %v369_v5 = vld [vmem:[%s1449_s2] sm:$0xff]  ;;  %v1045_v6 = vmov 0   ;;  %vm1457_vm0 = vcmask 121856  }
  0x39   : > { %s1040_s29 = smov 127   ;;  %s1041_s26 = smov 113   ;;  %895 = vset.pattern.permute.xlu1 %v1045_v6  ;;  %936 = vset.pattern.permute.xlu0 %v1045_v6  ;;  %v244_v8 = vand.u32 127, %v243_v7  ;;  %vm281_vm1 = vcmask 138240   ;;  %vm320_vm2 = vcmask 7168   ;;  %vm296_vm4 = vcmask 130048  }
  0x3a   : > { %871 = vrot.lane.b32.xlu1 %v870_v2, %s1036_s12  ;;  %861 = vrot.lane.b32.xlu0 %v870_v2, %s1037_s14  ;;  %s1042_s28 = smov 112   ;;  %s1043_s8 = smov 111   ;;  %vm1224_vm6 = vmneg %vm296_vm4  ;;  %vm1046_vm8 = vmmov 1   ;;  %vm1455_vm11 = vcmask 1039360   ;;  %vm1458_vm14 = vcmask 924672   ;;  %v530_v27 = vld [vmem:[%s1450_s3] sm:$0xff] }
  0x3b   : > { %v245_v9 = vadd.s32 128, %v244_v8  ;;  %v250_v13 = vand.u32 15, %v244_v8  ;;  %s617_s7 = scalar_lea.sflag [#allocation4], %s1183_s13  ;;  %p1498_p11 = scmp.ne.s32.totalorder %s1463_s30, 0 }
  0x3d   : > { %v257_v12 = vand.u32 15, %v245_v9  ;;  %vm1219_vm5 = vcmp.ge.s32.totalorder %v250_v13, 1  ;;  %vm1248_vm12 = vcmp.lt.s32.totalorder %v250_v13, 15 }
  0x3e   : > { %876 = vrot.lane.b32.xlu1 %v870_v2, %s1038_s16  ;;  %866 = vrot.lane.b32.xlu0 %v870_v2, %s1039_s25  ;;  %vm1454_vm10 = vmpackc.low %vm1224_vm6, %vm1219_vm5 }
  0x3f   : > { %vm1215_vm3 = vcmp.ge.s32.totalorder %v257_v12, 1  ;;  %vm1228_vm7 = vcmp.lt.s32.totalorder %v257_v12, 15  ;;  %vm1459_vm15 = vmpackc.low %vm1219_vm5, %vm1248_vm12 }
  0x40   : > { %vm1239_vm9 = vmpackc.low %vm1046_vm8, %vm1215_vm3 }
  0x41   : > { %vm1456_vm13 = vmpackc.low %vm1215_vm3, %vm1228_vm7 }
  0x42   : > { %881 = vrot.lane.b32.xlu0 %v880_v3, %s1040_s29  ;;  %886 = vrot.lane.b32.xlu1 %v880_v3, %s1041_s26 }
  0x46   : > { %891 = vrot.lane.b32.xlu0 %v870_v2, %s1042_s28  ;;  %360 = vrot.lane.b32.xlu1 %v1195_v1, %s1043_s8 }
  0x4a   : > { %358 = vrot.lane.b32.xlu0 %v1193_v0, %s1043_s8  ;;  %372 = vperm.xlu1 %895, %v369_v5   ;;  %v274_v5 = vld [vmem:[%s1448_s1] sm:$0xff] }
  0xac   : > { %v872_v10 = vpop.permute.xlu1 %871  ;;  %v862_v11 = vpop.permute.xlu0 %861 }
  0xad   : > { %v874_v14 = vunpack.i.h.bf16 %v872_v10  ;;  %v873_v15 = vunpack.i.l.bf16 %v872_v10  ;;  %v864_v16 = vunpack.i.h.bf16 %v862_v11  ;;  %v863_v17 = vunpack.i.l.bf16 %v862_v11 }
  0xaf   : > { %v306_v28 = vsel %vm1457_vm0, %v873_v15, %v874_v14  ;;  %v282_v30 = vsel %vm281_vm1, %v863_v17, %v864_v16  ;;  %v285_v33 = vsel %vm281_vm1, 0.0, %v863_v17  ;;  %v309_v42 = vsel %vm1457_vm0, 0.0, %v873_v15  ;;  %v531_v15 = vld [vmem:[%s1451_s4] sm:$0xff] }
  0xb0   : > { %v877_v18 = vpop.permute.xlu1 %876  ;;  %v867_v19 = vpop.permute.xlu0 %866 }
  0xb1   : > { %v879_v22 = vunpack.i.h.bf16 %v877_v18  ;;  %v878_v23 = vunpack.i.l.bf16 %v877_v18  ;;  %v869_v24 = vunpack.i.h.bf16 %v867_v19  ;;  %v868_v25 = vunpack.i.l.bf16 %v867_v19 }
  0xb3   : > { %v321_v29 = vsel %vm320_vm2, %v878_v23, %v879_v22  ;;  %v297_v31 = vsel %vm296_vm4, %v868_v25, %v869_v24  ;;  %v752_v38 = vpack.c.bf16 %v868_v25, %v285_v33  ;;  %v324_v43 = vsel %vm320_vm2, 0.0, %v878_v23 }
  0xb4   : > { %v749_v34 = vpack.c.bf16 %v297_v31, %v282_v30  ;;  %v882_v35 = vpop.permute.xlu0 %881  ;;  %v887_v37 = vpop.permute.xlu1 %886  ;;  %v755_v44 = vpack.c.bf16 %v321_v29, %v306_v28  ;;  %v758_v50 = vpack.c.bf16 %v324_v43, %v309_v42 }
  0xb5   : > { %v884_v39 = vunpack.i.h.bf16 %v882_v35  ;;  %v883_v40 = vunpack.i.l.bf16 %v882_v35  ;;  %v888_v41 = vunpack.i.l.bf16 %v887_v37  ;;  %v889_v48 = vunpack.i.h.bf16 %v887_v37 }
  0xb6   : > { %751 = vmatprep.subr.msk.bf16.mxu0 %vm1239_vm9, %v749_v34 }
  0xb7   : > { %754 = vmatpush1.bf16.msk.msra.mxu0 %vm1454_vm10, %v752_v38  ;;  %v335_v45 = vsel %vm1455_vm11, %v883_v40, 0.0  ;;  %v332_v46 = vsel %vm1455_vm11, %v884_v39, %v883_v40  ;;  %vm1460_vm10 = vcmask 916480   ;;  %v346_v51 = vsel %vm1458_vm14, %v888_v41, 0.0  ;;  %vm1281_vm11 = vmpackc.low %vm1228_vm7, %vm1046_vm8 }
  0xb8   : > { %v761_v47 = vpack.c.bf16 %v335_v45, %v1195_v1  ;;  %757 = vmatprep.subr.msk.bf16.mxu0 %vm1456_vm13, %v755_v44  ;;  %v892_v49 = vpop.permute.xlu0 %891  ;;  %v764_v55 = vpack.c.bf16 %v332_v46, %v1193_v0  ;;  %v343_v56 = vsel %vm1458_vm14, %v889_v48, %v888_v41  ;;  %vm1297_vm13 = vmpackc.low %vm1248_vm12, %vm1046_vm8  ;;  %vm362_vm14 = vcmask 908288   ;;  %v361_v61 = vpop.permute.xlu1 %360 }
  0xb9   : > { %v894_v52 = vunpack.i.h.bf16 %v892_v49  ;;  %v893_v53 = vunpack.i.l.bf16 %v892_v49  ;;  %vm1305_vm0 = vmpackc.low %vm1460_vm10, %vm1215_vm3  ;;  %v366_v2 = vsel %vm362_vm14, %v361_v61, 0.0 }
  0xbb   : > { %760 = vmatpush1.bf16.msk.msra.mxu0 %vm1459_vm15, %v758_v50  ;;  %v767_v57 = vpack.c.bf16 %v894_v52, %v346_v51  ;;  %v354_v59 = vsel %vm1460_vm10, %v893_v53, %v894_v52  ;;  %vm1316_vm15 = vmpackc.low %vm1046_vm8, %vm1219_vm5  ;;  %vm375_vm10 = vcmask 588800  }
  0xbc   : > { %763 = vmatprep.subr.msk.bf16.mxu0 %vm1281_vm11, %v761_v47  ;;  %v770_v62 = vpack.c.bf16 %v354_v59, %v343_v56  ;;  %v359_v3 = vpop.permute.xlu0 %358 }
  0xbd   : > { %v363_v4 = vsel %vm362_vm14, %v359_v3, %v361_v61 }
  0xbf   : > { %766 = vmatpush1.bf16.msk.msra.mxu0 %vm1297_vm13, %v764_v55 }
  0xc0   : > { %769 = vmatprep.subr.msk.bf16.mxu0 %vm1305_vm0, %v767_v57 }
  0xc3   : > { %772 = vmatpush1.bf16.msk.msra.mxu0 %vm1316_vm15, %v770_v62 }
  0xc4   : > { %723 = vmatprep.subr.msk.mxu0 %vm1228_vm7, %v366_v2 }
  0xc7   : > { %724 = vmatpush1.msk.msra.mxu0 %vm1248_vm12, %v363_v4 }
  0xc8   : > { %725 = vmatmul.mubr.msk.f32.vlgmr.msra.gmra.mrb[0].mxu0 %vm375_vm10, %v274_v5  ;;  %vm1488_vm10 = vcmask 121856  }
  0xc9   : > { %v373_v6 = vpop.permute.xlu1 %372 }
 0x19b   : > { %v445_v7 = vpop.f32.mrb[0].mxu0 }
 0x19c   : > { %v446_v8 = vadd.f32 %v445_v7, %v373_v6  ;;  %v447_v9 = vpop.f32.mrb[1].mxu0 }
 0x19d   : > { %v448_v10 = vadd.f32 %v447_v9, %v373_v6 }
 0x19e   : > { %v1331_v11 = vmax.f32 %v446_v8, 0.0 }
 0x19f   : > { %v451_v12 = vmax.f32 %v448_v10, 0.0 }
 0x1a1   : > { %v901_v13 = vpack.i.bf16 %v451_v12, %v1331_v11  ;;  %v921_v14 = vpack.i.bf16 %v1331_v11, %v451_v12 }
 0x1a3   : > { %902 = vrot.lane.b32.xlu1 %v901_v13, %s1039_s25  ;;  %897 = vrot.lane.b32.xlu0 %v901_v13, %s1037_s14  ;;  %s240_s25 = scalar_lea.vmem [#allocation5], %s708_s17  ;;  %s1047_s17 = smov [#allocation5]  }
 0x1a4   : > { %s971_s9 = sshll.u32 %s1047_s17, 4  ;;  %s972_s9 = int_to_ptr.vmem [resolvable:$false] %s971_s9 }
 0x1a5   : > { %s973_s10 = scalar_lea.vmem %s972_s9, 512 }
 0x1a7   : > { %912 = vrot.lane.b32.xlu1 %v901_v13, %s1038_s16  ;;  %907 = vrot.lane.b32.xlu0 %v901_v13, %s1036_s12  ;;  %s748_s16 = sshll.u32 %s1099_s22, 8 }
 0x1ab   : > { %922 = vrot.lane.b32.xlu1 %v921_v14, %s1041_s26  ;;  %917 = vrot.lane.b32.xlu0 %v921_v14, %s1040_s29  ;;  %s631_s29 = sshll.u32 %s240_s25, 4  ;;  %s1405_s29 = int_to_ptr.vmem [resolvable:$true] %s631_s29 }
 0x1ac   : > { %s967_s22 = scalar_lea.vmem %s1405_s29, 256  ;;  %p974_p7 = scmp.lt.s32.totalorder %s1405_s29, %s972_s9 }
 0x1ad   : > { %p968_p6 = scmp.ne.s32.totalorder %s1405_s29, %s967_s22  ;;  %p975_p10 = scmp.lt.s32.totalorder %s973_s10, %s967_s22 }
 0x1af   : > { %932 = vrot.lane.b32.xlu1 %v921_v14, %s1043_s8  ;;  %927 = vrot.lane.b32.xlu0 %v901_v13, %s1042_s28  ;;  %s1403_s8 = scalar_lea.hbm %s1452_s5, %s748_s16  ;;  %p969_p12 = pnand %p968_p6, %p1498_p11 }
 0x1b0   : > { %p976_p2 = por %p975_p10, %p974_p7 }
 0x1b1   : > { %p970_p13 = pneg %p969_p12 }
 0x1b3   : > { %534 = vperm.xlu0 %936, %v531_v15   ;;  %p977_p4 = pnand %p976_p2, %p970_p13 }
 0x215   : > { %v903_v16 = vpop.permute.xlu1 %902  ;;  %v898_v17 = vpop.permute.xlu0 %897 }
 0x216   : > { %v905_v18 = vunpack.i.h.bf16 %v903_v16  ;;  %v904_v19 = vunpack.i.l.bf16 %v903_v16  ;;  %v900_v22 = vunpack.i.h.bf16 %v898_v17  ;;  %v899_v23 = vunpack.i.l.bf16 %v898_v17 }
 0x218   : > { %v461_v24 = vsel %vm281_vm1, 0.0, %v899_v23  ;;  %v458_v25 = vsel %vm281_vm1, %v899_v23, %v900_v22  ;;  %v468_v28 = vsel %vm296_vm4, %v904_v19, %v905_v18  ;;  %vm1489_vm1 = vmmov %vm1488_vm10 }
 0x219   : > { %v913_v29 = vpop.permute.xlu1 %912  ;;  %v908_v30 = vpop.permute.xlu0 %907  ;;  %v773_v31 = vpack.c.bf16 %v468_v28, %v458_v25  ;;  %v776_v33 = vpack.c.bf16 %v904_v19, %v461_v24  ;;  %vm1490_vm4 = vmpackc.low %vm1224_vm6, %vm1219_vm5 }
 0x21a   : > { %v915_v34 = vunpack.i.h.bf16 %v913_v29  ;;  %v914_v35 = vunpack.i.l.bf16 %v913_v29  ;;  %v910_v37 = vunpack.i.h.bf16 %v908_v30  ;;  %v909_v38 = vunpack.i.l.bf16 %v908_v30  ;;  %vm1494_vm6 = vmpackc.low %vm1219_vm5, %vm1248_vm12 }
 0x21b   : > { %775 = vmatprep.subr.msk.bf16.mxu1 %vm1239_vm9, %v773_v31  ;;  %vm1492_vm9 = vcmask 1039360   ;;  %vm1497_vm5 = vcmask 916480  }
 0x21c   : > { %v486_v39 = vsel %vm320_vm2, %v914_v35, %v915_v34  ;;  %v489_v40 = vsel %vm320_vm2, 0.0, %v914_v35  ;;  %v476_v41 = vsel %vm1488_vm10, %v909_v38, %v910_v37  ;;  %v479_v42 = vsel %vm1489_vm1, 0.0, %v909_v38  ;;  %778 = vmatpush1.bf16.msk.msra.mxu1 %vm1490_vm4, %v776_v33  ;;  %vm1491_vm2 = vmpackc.low %vm1215_vm3, %vm1228_vm7 }
 0x21d   : > { %v779_v43 = vpack.c.bf16 %v486_v39, %v476_v41  ;;  %v782_v44 = vpack.c.bf16 %v489_v40, %v479_v42  ;;  %v923_v45 = vpop.permute.xlu1 %922  ;;  %v918_v46 = vpop.permute.xlu0 %917  ;;  %vm1493_vm10 = vmmov %vm1492_vm9  ;;  %vm1495_vm3 = vcmask 924672  }
 0x21e   : > { %v920_v32 = vunpack.i.h.bf16 %v918_v46  ;;  %v919_v47 = vunpack.i.l.bf16 %v918_v46  ;;  %v924_v48 = vunpack.i.l.bf16 %v923_v45  ;;  %v925_v49 = vunpack.i.h.bf16 %v923_v45  ;;  %vm1496_vm1 = vmmov %vm1495_vm3 }
 0x21f   : > { %781 = vmatprep.subr.msk.bf16.mxu1 %vm1491_vm2, %v779_v43  ;;  %vm798_vm4 = vmpackc.low %vm1046_vm8, %vm1228_vm7 }
 0x220   : > { %v496_v26 = vsel %vm1492_vm9, %v920_v32, %v919_v47  ;;  %v499_v50 = vsel %vm1493_vm10, %v919_v47, 0.0  ;;  %784 = vmatpush1.bf16.msk.msra.mxu1 %vm1494_vm6, %v782_v44  ;;  %v509_v59 = vsel %vm1495_vm3, %v924_v48, 0.0  ;;  %v506_v21 = vsel %vm1496_vm1, %v925_v49, %v924_v48 }
 0x221   : > { %v785_v51 = vpack.c.bf16 %v499_v50, %v451_v12  ;;  %v788_v52 = vpack.c.bf16 %v496_v26, %v1331_v11  ;;  %v933_v53 = vpop.permute.xlu1 %932  ;;  %v928_v20 = vpop.permute.xlu0 %927 }
 0x222   : > { %v934_v55 = vunpack.i.l.bf16 %v933_v53  ;;  %v930_v56 = vunpack.i.h.bf16 %v928_v20  ;;  %v929_v57 = vunpack.i.l.bf16 %v928_v20  ;;  %v935_v61 = vunpack.i.h.bf16 %v933_v53 }
 0x223   : > { %787 = vmatprep.subr.msk.bf16.mxu1 %vm1281_vm11, %v785_v51  ;;  %vm801_vm11 = vmpackc.low %vm1046_vm8, %vm1248_vm12 }
 0x224   : > { %v527_v62 = vsel %vm362_vm14, %v934_v55, 0.0  ;;  %v791_v2 = vpack.c.bf16 %v930_v56, %v509_v59  ;;  %v516_v3 = vsel %vm1497_vm5, %v929_v57, %v930_v56  ;;  %790 = vmatpush1.bf16.msk.msra.mxu1 %vm1297_vm13, %v788_v52  ;;  %v524_v54 = vsel %vm362_vm14, %v935_v61, %v934_v55 }
 0x225   : > { %v794_v4 = vpack.c.bf16 %v516_v3, %v506_v21  ;;  %v797_v5 = vpack.c.bf16 %v1195_v1, %v527_v62  ;;  %v800_v58 = vpack.c.bf16 %v1193_v0, %v524_v54 }
 0x226   : > { %793 = vmatprep.subr.msk.bf16.mxu1 %vm1305_vm0, %v791_v2  ;;  %vm537_vm0 = vcmask 654336  }
 0x228   : > { %796 = vmatpush1.bf16.msk.msra.mxu1 %vm1316_vm15, %v794_v4 }
 0x229   : > { %799 = vmatprep.subr.msk.bf16.mxu1 %vm798_vm4, %v797_v5 }
 0x22c   : > { %802 = vmatpush1.bf16.msk.msra.mxu1 %vm801_vm11, %v800_v58 }
 0x22f   : > { %741 = vmatmul.mubr.msk.f32.vlgmr.msra.gmra.mrb[0].mxu1 %vm537_vm0, %v530_v27 }
 0x232   : > { %v535_v60 = vpop.permute.xlu0 %534 }
 0x302   : > { %v607_v1 = vpop.f32.mrb[0].mxu1 }
 0x303   : > { %v608_v63 = vadd.f32 %v607_v1, %v535_v60  ;;  %v609_v6 = vpop.f32.mrb[1].mxu1 }
 0x304   : > { %v610_v36 = vadd.f32 %v609_v6, %v535_v60 }
 0x305   : > { %v612_v7 = vmax.f32 %v608_v63, 0.0 }
 0x306   : > { %v613_v0 = vmax.f32 %v610_v36, 0.0 }
 0x307   : > { %614 = vst [vmem:[%s240_s25] sm:$0xff] %v612_v7 }
 0x308   : > { %615 = vst [vmem:[%s240_s25 + $0x8] sm:$0xff] %v613_v0 }
 0x309   : > { %980 = shalt.err (!%p977_p4)
}
 0x30a   : > { %s981_s13 = scalar_lea.hbm %s1403_s8, 256  ;;  %s985_s15 = scalar_lea.hbm %s1452_s5, 512 }
 0x30b   : > { %p982_p5 = scmp.ne.s32.totalorder %s1403_s8, %s981_s13  ;;  %p986_p0 = scmp.lt.u32.totalorder %s1403_s8, %s1452_s5 }
 0x30c   : > { %p987_p1 = scmp.lt.u32.totalorder %s985_s15, %s981_s13  ;;  %p989_p6 = scmp.lt.u32.totalorder %s981_s13, %s1403_s8 }
 0x30d   : > { %p983_p8 = pnand %p982_p5, %p1498_p11 }
 0x30e   : > { %p988_p3 = por %p987_p1, %p986_p0 }
 0x30f   : > { %p984_p9 = pneg %p983_p8 }
 0x310   : > { %p990_p12 = por %p989_p6, %p988_p3 }
 0x312   : > { %p991_p13 = pnand %p990_p12, %p984_p9 }
 0x314   : > { %994 = shalt.err (!%p991_p13)
}
 0x315   : > { %805 = dma.vmem_to_hbm [thread:$0]  (%p1498_p11), %s1405_s29, 256, %s1403_s8, %s617_s7  }
 0x316 PF: > { %s643_s16 = sand.u32 1, %s1021_s18   ;;  %p1499_p7 = scmp.ne.s32.totalorder %s1464_s6, 0 }
 0x317   : > { %p1500_p10 = scmp.ge.s32.totalorder %s1033_s21, 2  ;;  %s644_s25 = scalar_lea.sflag [#allocation4], %s643_s16 }
 0x319   : > { %p812_p2 = pnand %p1500_p10, %p1499_p7 }
 0x31b   : > { %1016 = dma.done.wait (!%p812_p2), %s644_s25, 256  }
 0x31c   : > { %1018 = vsyncadd (!%p812_p2), %s644_s25, 4294967040  ;;  %p18_p4 = scmp.ge.s32.totalorder %s1103_s24, 4   ;;  %s1501_s18 = smov %s1025_s19 }
 0x31d   : > { %s1502_s19 = smov %s1029_s20  ;;  %s1503_s20 = smov %s1115_s27 }
 0x31e   : > { %s1504_s21 = smov %s1103_s24  ;;  %20 = sbr.rel (!%p18_p4) target bundleno = 5 (0x5), region = 85 }
 0x325   :  { %649 = vsyncpa [#allocation3], 1 }
 0x326   :  { %651 = vsyncpa [#allocation3 + $0x1], 1 }
 0x327   :  { %652 = vsyncpa [#allocation4], 1 }
 0x328   :  { %654 = vsyncpa [#allocation4 + $0x1], 1 }

</bundles_post_ra>
